<compile_context>
chip_gen: v7x
topology: tpu7x:2x2x1
jax: 0.10.0
libtpu: 0.0.40
codegen_flags: <defaults>
</compile_context>

<pallas_src>
import functools

import jax
import jax.numpy as jnp
from jax import lax
from jax.experimental import pallas as pl
from jax.experimental.pallas import tpu as pltpu


def _lane_partial(x, lw):
    """Reduce (tm, tc) -> (tm, lw) with lane-aligned VPU adds (no per-step XLU)."""
    tc = x.shape[1]
    if lw == 1:
        return jnp.sum(x, axis=1, keepdims=True)
    p = x[:, 0:lw]
    for j in range(1, tc // lw):
        p = p + x[:, j * lw:(j + 1) * lw]
    return p


def _ntxent_kernel(fr_ref, fc_ref, out_ref, acc_ref, *,
                   inv_temp, tc, lw, resident_cols):
    """One (row_tile x col_tile) step of the NT-Xent loss.

    fr_ref : (tm, D) row block of normalized features, pre-scaled by 1/T
    fc_ref : (tc, D) column block, or the full (N, D) VMEM-resident array
    out_ref: (tm, 128) per-row logsumexp over negatives (lane-broadcast)
    acc_ref: (tm, lw)  running lane-partial sum of exp(logit - 1/T)
    """
    rt = pl.program_id(0)
    ct = pl.program_id(1)
    tm = fr_ref.shape[0]

    @pl.when(ct == 0)
    def _init():
        acc_ref[...] = jnp.zeros_like(acc_ref)

    fr = fr_ref[...]
    if resident_cols:
        c_start = pl.multiple_of(ct * tc, tc)
        fc = fc_ref[pl.ds(c_start, tc), :]
    else:
        fc = fc_ref[...]

    # logits[m, c] = <f_row_m, f_col_c> / T  (1/T folded into the row operand);
    # contract the feature dim of both operands (operand-side transpose on the MXU).
    logits = lax.dot_general(
        fr, fc,
        dimension_numbers=(((1,), (1,)), ((), ())),
        preferred_element_type=jnp.float32)

    # Constant-shift online sum-of-exp: after L2 normalization every logit <= 1/T,
    # so exp(logit - 1/T) <= 1 and no per-row max pass is needed.
    e = jnp.exp(logits - inv_temp)
    acc_ref[...] += _lane_partial(e, lw)

    # Self-similarity diagonal: remove it only on tiles whose row/col ranges
    # intersect (at most 1-2 column tiles per row tile); exact for f32 and bf16.
    r0 = rt * tm
    c0 = ct * tc

    @pl.when(jnp.logical_and(r0 < c0 + tc, c0 < r0 + tm))
    def _remove_diag():
        grow = r0 + lax.broadcasted_iota(jnp.int32, (tm, tc), 0)
        gcol = c0 + lax.broadcasted_iota(jnp.int32, (tm, tc), 1)
        diag = jnp.where(gcol == grow, e, 0.0)
        acc_ref[...] -= _lane_partial(diag, lw)

    @pl.when(ct == pl.num_programs(1) - 1)
    def _finalize():
        s = jnp.sum(acc_ref[...], axis=1, keepdims=True)   # one XLU reduce / row tile
        per_row = jnp.log(s) + inv_temp                    # logsumexp over negatives
        out_ref[...] = jnp.broadcast_to(per_row, out_ref.shape)


def _pick_tile(n, target):
    """Largest tile <= target that divides n and is sublane(8)-aligned (or == n)."""
    t = min(int(target), n)
    while t > 8:
        if n % t == 0 and t % 8 == 0:
            return t
        t -= 8
    if n % 8 == 0:
        return min(8, n)
    return n  # tiny / odd extent: single full-extent block


def ntxent_loss(z_i, z_j, temperature: float = 0.1, *,
                row_tile: int = 512, col_tile: int = 1024,
                use_bf16_matmul: bool = True,
                resident_col_bytes: int = 16 * 1024 * 1024,
                vmem_limit_bytes=None):
    """NT-Xent loss (single-device semantics; gather() == identity)."""
    assert z_i.shape == z_j.shape and z_i.ndim == 2
    b, d = z_i.shape
    n = 2 * b
    inv_temp = float(1.0 / temperature)

    # ---- O(N*D) preprocessing, once, outside the N^2 grid -------------------
    z = jnp.concatenate([z_i, z_j], axis=0).astype(jnp.float32)
    inv_norm = lax.rsqrt(jnp.maximum(jnp.sum(z * z, axis=1, keepdims=True), 1e-24))
    f = z * inv_norm                                    # F.normalize(z, dim=1)
    # Positive logits in f32 (exact even when the N x N matmul runs in bf16).
    pos = inv_temp * jnp.sum(f[:b] * f[b:], axis=1)     # (B,), duplicated in the ref

    mm_dtype = jnp.bfloat16 if use_bf16_matmul else jnp.float32
    mm_bytes = 2 if use_bf16_matmul else 4
    f_rows = (f * inv_temp).astype(mm_dtype)            # 1/T folded into the LHS
    f_cols = f.astype(mm_dtype)

    # ---- generation-aware VMEM / tile sizing ---------------------------------
    if vmem_limit_bytes is None:
        try:
            cap = int(pltpu.get_tpu_info().vmem_capacity_bytes)
        except Exception:
            cap = 64 * 1024 * 1024                      # conservative (v7x per-TC)
        vmem_limit_bytes = min(cap * 3 // 4, 100 * 1024 * 1024)
    vmem_limit_bytes = int(vmem_limit_bytes)

    # Keep the column operand fully VMEM-resident (single HBM pass) when small.
    resident_cols = (2 * n * d * mm_bytes
                     <= min(int(resident_col_bytes), vmem_limit_bytes // 3))

    tm = _pick_tile(n, min(row_tile, max(8, n // 2)))   # >= 2 row tiles (megacore)
    tc = _pick_tile(n, col_tile)

    def _vmem_use(tm_, tc_):
        rows = 2 * tm_ * d * mm_bytes
        cols = 2 * n * d * mm_bytes if resident_cols else 2 * tc_ * d * mm_bytes
        outs = 2 * tm_ * 128 * 4 + tm_ * 128 * 4
        interm = 3 * tm_ * tc_ * 4                      # logits + exp + slack
        return rows + cols + outs + interm

    for _ in range(8):                                  # shrink col tile first
        if _vmem_use(tm, tc) <= 0.8 * vmem_limit_bytes or tc <= 128:
            break
        new_tc = _pick_tile(n, tc // 2)
        if new_tc >= tc:
            break
        tc = new_tc
    for _ in range(8):                                  # then row tile
        if _vmem_use(tm, tc) <= 0.8 * vmem_limit_bytes or tm <= 128:
            break
        new_tm = _pick_tile(n, tm // 2)
        if new_tm >= tm:
            break
        tm = new_tm

    if tc % 128 == 0:
        lw = 128
    elif tc % 8 == 0:
        lw = 8
    else:
        lw = 1

    grid = (n // tm, n // tc)

    kernel = functools.partial(
        _ntxent_kernel, inv_temp=inv_temp, tc=tc, lw=lw,
        resident_cols=resident_cols)

    if resident_cols:
        col_spec = pl.BlockSpec((n, d), lambda rt, ct: (0, 0))   # fetched once
    else:
        col_spec = pl.BlockSpec((tc, d), lambda rt, ct: (ct, 0))

    out = pl.pallas_call(
        kernel,
        out_shape=jax.ShapeDtypeStruct((n, 128), jnp.float32),
        grid_spec=pltpu.PrefetchScalarGridSpec(
            num_scalar_prefetch=0,
            grid=grid,
            in_specs=[
                pl.BlockSpec((tm, d), lambda rt, ct: (rt, 0)),   # row block
                col_spec,                                        # column operand
            ],
            out_specs=pl.BlockSpec((tm, 128), lambda rt, ct: (rt, 0)),
            scratch_shapes=[
                pltpu.VMEM((tm, lw), jnp.float32),   # lane-partial sum of exp
            ],
        ),
        compiler_params=pltpu.CompilerParams(
            dimension_semantics=("parallel", "arbitrary"),
            vmem_limit_bytes=vmem_limit_bytes,
        ),
    )(f_rows, f_cols)

    # loss = repulsion + attraction = mean_i logsumexp_i(negatives) - mean(positives)
    return jnp.mean(out[:, 0]) - jnp.mean(pos)


def _reference_loss(z_i, z_j, temperature: float = 0.1):
    # Pure-JAX reference mirroring the PyTorch module (eager, f32).
    z = jnp.concatenate([z_i, z_j], axis=0).astype(jnp.float32)
    n = z.shape[0]
    feats = z / jnp.maximum(jnp.linalg.norm(z, axis=1, keepdims=True), 1e-12)
    sim = feats @ feats.T / temperature
    pos = jnp.concatenate(
        [jnp.diagonal(sim, offset=n // 2), jnp.diagonal(sim, offset=-(n // 2))]
    )
    mask = ~jnp.eye(n, dtype=bool)
    neg = sim[mask].reshape(n, n - 1)
    return -pos.mean() + jax.scipy.special.logsumexp(neg, axis=1).mean()


if __name__ == "__main__":
    key = jax.random.PRNGKey(0)
    k1, k2 = jax.random.split(key)

    # SimCLR-style projection size (lane-aligned D), small batch.
    B, D = 32, 128
    z_i = jax.random.normal(k1, (B, D), dtype=jnp.float32)
    z_j = jax.random.normal(k2, (B, D), dtype=jnp.float32)
    ref = _reference_loss(z_i, z_j, temperature=0.1)

    # 1) f32 MXU, multi-tile grid (4 row x 2 col), VMEM-resident column operand.
    loss_f32 = jax.block_until_ready(
        ntxent_loss(z_i, z_j, temperature=0.1,
                    row_tile=16, col_tile=32, use_bf16_matmul=False))
    assert jnp.allclose(loss_f32, ref, rtol=1e-4, atol=1e-4), (loss_f32, ref)

    # 2) f32 MXU, HBM-streamed (non-resident) column tiles.
    loss_stream = jax.block_until_ready(
        ntxent_loss(z_i, z_j, temperature=0.1, row_tile=16, col_tile=32,
                    use_bf16_matmul=False, resident_col_bytes=0))
    assert jnp.allclose(loss_stream, ref, rtol=1e-4, atol=1e-4), (loss_stream, ref)

    # 3) bf16 MXU fast path, default tiles (positives / logsumexp stay f32-exact).
    loss_bf16 = jax.block_until_ready(
        ntxent_loss(z_i, z_j, temperature=0.1, use_bf16_matmul=True))
    assert jnp.allclose(loss_bf16, ref, rtol=5e-2, atol=5e-2), (loss_bf16, ref)

    # 4) Tiny shape (small full-extent blocks) sanity check.
    k3, k4 = jax.random.split(jax.random.PRNGKey(1))
    z_i2 = jax.random.normal(k3, (8, 32), dtype=jnp.float32)
    z_j2 = jax.random.normal(k4, (8, 32), dtype=jnp.float32)
    loss_small = jax.block_until_ready(
        ntxent_loss(z_i2, z_j2, temperature=0.1, use_bf16_matmul=False))
    ref_small = _reference_loss(z_i2, z_j2, temperature=0.1)
    assert jnp.allclose(loss_small, ref_small, rtol=1e-4, atol=1e-4), (loss_small, ref_small)

    print("KERNEL_OK")
</pallas_src>

<mosaic_0001>
module attributes {stable_mosaic.version = 11 : i64} {
  func.func @_ntxent_kernel(%arg0: i32, %arg1: i32, %arg2: memref<16x128xf32, #tpu.memory_space<vmem>>, %arg3: memref<64x128xf32, #tpu.memory_space<vmem>>, %arg4: memref<16x128xf32, #tpu.memory_space<vmem>>, %arg5: memref<16x8xf32, #tpu.memory_space<vmem>>) attributes {dimension_semantics = [#tpu.dimension_semantics<parallel>, #tpu.dimension_semantics<arbitrary>], iteration_bounds = array<i64: 4, 2>, scalar_prefetch = 0 : i64, scratch_operands = 1 : i64, tpu.core_type = #tpu.core_type<tc>, window_params = [{transform_indices = @transform_0, window_bounds = array<i64: 16, 128>}, {pipeline_mode = #tpu.pipeline_mode<synchronous>, transform_indices = @transform_1, window_bounds = array<i64: 64, 128>}, {transform_indices = @transform_2, window_bounds = array<i64: 16, 128>}]} {
    %c0_i32 = arith.constant 0 : i32
    %0 = arith.cmpi eq, %arg1, %c0_i32 : i32
    %1 = arith.extui %0 : i1 to i32
    %c0_i32_0 = arith.constant 0 : i32
    %2 = arith.cmpi ne, %1, %c0_i32_0 : i32
    scf.if %2 {
      %cst_13 = arith.constant 0.000000e+00 : f32
      %34 = vector.broadcast %cst_13 : f32 to vector<16x8xf32>
      %c0_14 = arith.constant 0 : index
      %c0_15 = arith.constant 0 : index
      %35 = vector.load %arg5[%c0_14, %c0_15] : memref<16x8xf32, #tpu.memory_space<vmem>>, vector<16x8xf32>
      tpu.vector_store %arg5[%c0_14, %c0_15], %34 {strides = array<i32>} : memref<16x8xf32, #tpu.memory_space<vmem>>, vector<16x8xf32>,
    } else {
    }
    %c0 = arith.constant 0 : index
    %c0_1 = arith.constant 0 : index
    %3 = vector.load %arg2[%c0, %c0_1] : memref<16x128xf32, #tpu.memory_space<vmem>>, vector<16x128xf32>
    %c32_i32 = arith.constant 32 : i32
    %4 = arith.muli %arg1, %c32_i32 : i32
    %5 = tpu.assume_multiple %4, 32 : i32
    %6 = arith.index_cast %5 : i32 to index
    %c0_2 = arith.constant 0 : index
    %7 = vector.load %arg3[%6, %c0_2] : memref<64x128xf32, #tpu.memory_space<vmem>>, vector<32x128xf32>
    %cst = arith.constant dense<0.000000e+00> : vector<16x32xf32>
    %8 = tpu.matmul %3, %7, %cst {dimension_numbers = #tpu.dot_dimension_numbers<[1], [1], [0], [0], [0, 0, 1, 0], [], []>} : vector<16x128xf32>, vector<32x128xf32>, vector<16x32xf32> -> vector<16x32xf32>
    %cst_3 = arith.constant 1.000000e+01 : f32
    %9 = vector.broadcast %cst_3 : f32 to vector<16x32xf32>
    %10 = arith.subf %8, %9 : vector<16x32xf32>
    %11 = math.exp %10 : vector<16x32xf32>
    %c0_4 = arith.constant 0 : index
    %c0_5 = arith.constant 0 : index
    %12 = vector.load %arg5[%c0_4, %c0_5] : memref<16x8xf32, #tpu.memory_space<vmem>>, vector<16x8xf32>
    %13 = vector.extract_strided_slice %11 {offsets = [0, 0], sizes = [16, 8], strides = [1, 1]} : vector<16x32xf32> to vector<16x8xf32>
    %14 = vector.extract_strided_slice %11 {offsets = [0, 8], sizes = [16, 8], strides = [1, 1]} : vector<16x32xf32> to vector<16x8xf32>
    %15 = arith.addf %13, %14 : vector<16x8xf32>
    %16 = vector.extract_strided_slice %11 {offsets = [0, 16], sizes = [16, 8], strides = [1, 1]} : vector<16x32xf32> to vector<16x8xf32>
    %17 = arith.addf %15, %16 : vector<16x8xf32>
    %18 = vector.extract_strided_slice %11 {offsets = [0, 24], sizes = [16, 8], strides = [1, 1]} : vector<16x32xf32> to vector<16x8xf32>
    %19 = arith.addf %17, %18 : vector<16x8xf32>
    %20 = arith.addf %12, %19 : vector<16x8xf32>
    %c0_6 = arith.constant 0 : index
    %c0_7 = arith.constant 0 : index
    %21 = vector.load %arg5[%c0_6, %c0_7] : memref<16x8xf32, #tpu.memory_space<vmem>>, vector<16x8xf32>
    tpu.vector_store %arg5[%c0_6, %c0_7], %20 {strides = array<i32>} : memref<16x8xf32, #tpu.memory_space<vmem>>, vector<16x8xf32>,
    %c16_i32 = arith.constant 16 : i32
    %22 = arith.muli %arg0, %c16_i32 : i32
    %c32_i32_8 = arith.constant 32 : i32
    %23 = arith.muli %arg1, %c32_i32_8 : i32
    %c32_i32_9 = arith.constant 32 : i32
    %24 = arith.addi %23, %c32_i32_9 : i32
    %25 = arith.cmpi slt, %22, %24 : i32
    %c16_i32_10 = arith.constant 16 : i32
    %26 = arith.addi %22, %c16_i32_10 : i32
    %27 = arith.cmpi slt, %23, %26 : i32
    %28 = arith.andi %25, %27 : i1
    %29 = arith.extui %28 : i1 to i32
    %c0_i32_11 = arith.constant 0 : i32
    %30 = arith.cmpi ne, %29, %c0_i32_11 : i32
    scf.if %30 {
      %34 = tpu.iota {dimensions = array<i32: 0>} : vector<16x32xi32>
      %35 = vector.broadcast %22 : i32 to vector<16x32xi32>
      %36 = arith.addi %35, %34 : vector<16x32xi32>
      %37 = tpu.iota {dimensions = array<i32: 1>} : vector<16x32xi32>
      %38 = vector.broadcast %23 : i32 to vector<16x32xi32>
      %39 = arith.addi %38, %37 : vector<16x32xi32>
      %40 = arith.cmpi eq, %39, %36 : vector<16x32xi32>
      %cst_13 = arith.constant 0.000000e+00 : f32
      %41 = vector.broadcast %cst_13 : f32 to vector<16x32xf32>
      %42 = arith.select %40, %11, %41 : vector<16x32xi1>, vector<16x32xf32>
      %c0_14 = arith.constant 0 : index
      %c0_15 = arith.constant 0 : index
      %43 = vector.load %arg5[%c0_14, %c0_15] : memref<16x8xf32, #tpu.memory_space<vmem>>, vector<16x8xf32>
      %44 = vector.extract_strided_slice %42 {offsets = [0, 0], sizes = [16, 8], strides = [1, 1]} : vector<16x32xf32> to vector<16x8xf32>
      %45 = vector.extract_strided_slice %42 {offsets = [0, 8], sizes = [16, 8], strides = [1, 1]} : vector<16x32xf32> to vector<16x8xf32>
      %46 = arith.addf %44, %45 : vector<16x8xf32>
      %47 = vector.extract_strided_slice %42 {offsets = [0, 16], sizes = [16, 8], strides = [1, 1]} : vector<16x32xf32> to vector<16x8xf32>
      %48 = arith.addf %46, %47 : vector<16x8xf32>
      %49 = vector.extract_strided_slice %42 {offsets = [0, 24], sizes = [16, 8], strides = [1, 1]} : vector<16x32xf32> to vector<16x8xf32>
      %50 = arith.addf %48, %49 : vector<16x8xf32>
      %51 = arith.subf %43, %50 : vector<16x8xf32>
      %c0_16 = arith.constant 0 : index
      %c0_17 = arith.constant 0 : index
      %52 = vector.load %arg5[%c0_16, %c0_17] : memref<16x8xf32, #tpu.memory_space<vmem>>, vector<16x8xf32>
      tpu.vector_store %arg5[%c0_16, %c0_17], %51 {strides = array<i32>} : memref<16x8xf32, #tpu.memory_space<vmem>>, vector<16x8xf32>,
    } else {
    }
    %c1_i32 = arith.constant 1 : i32
    %31 = arith.cmpi eq, %arg1, %c1_i32 : i32
    %32 = arith.extui %31 : i1 to i32
    %c0_i32_12 = arith.constant 0 : i32
    %33 = arith.cmpi ne, %32, %c0_i32_12 : i32
    scf.if %33 {
      %c0_13 = arith.constant 0 : index
      %c0_14 = arith.constant 0 : index
      %34 = vector.load %arg5[%c0_13, %c0_14] : memref<16x8xf32, #tpu.memory_space<vmem>>, vector<16x8xf32>
      %cst_15 = arith.constant dense<0.000000e+00> : vector<16xf32>
      %35 = vector.multi_reduction <add>, %34, %cst_15 [1] : vector<16x8xf32> to vector<16xf32>
      %36 = vector.shape_cast %35 : vector<16xf32> to vector<16x1xf32>
      %37 = math.log %36 : vector<16x1xf32>
      %cst_16 = arith.constant 1.000000e+01 : f32
      %38 = vector.broadcast %cst_16 : f32 to vector<16x1xf32>
      %39 = arith.addf %37, %38 : vector<16x1xf32>
      %40 = vector.shape_cast %39 : vector<16x1xf32> to vector<16x1xf32>
      %41 = vector.broadcast %40 : vector<16x1xf32> to vector<16x128xf32>
      %c0_17 = arith.constant 0 : index
      %c0_18 = arith.constant 0 : index
      %42 = vector.load %arg4[%c0_17, %c0_18] : memref<16x128xf32, #tpu.memory_space<vmem>>, vector<16x128xf32>
      tpu.vector_store %arg4[%c0_17, %c0_18], %41 {strides = array<i32>} : memref<16x128xf32, #tpu.memory_space<vmem>>, vector<16x128xf32>,
    } else {
    }
    return
  }
  func.func @transform_0(%arg0: i32, %arg1: i32) -> (i32, i32) {
    %c0_i32 = arith.constant 0 : i32
    %c0_i32_0 = arith.constant 0 : i32
    return %arg0, %c0_i32 : i32, i32
  }
  func.func @transform_1(%arg0: i32, %arg1: i32) -> (i32, i32) {
    %c0_i32 = arith.constant 0 : i32
    %c0_i32_0 = arith.constant 0 : i32
    %c0_i32_1 = arith.constant 0 : i32
    return %c0_i32, %c0_i32_0 : i32, i32
  }
  func.func @transform_2(%arg0: i32, %arg1: i32) -> (i32, i32) {
    %c0_i32 = arith.constant 0 : i32
    %c0_i32_0 = arith.constant 0 : i32
    return %arg0, %c0_i32 : i32, i32
  }
}

</mosaic_0001>

<bundles_post_ra>
// kernel: tpu_custom_call.1
= control target key start
LH: loop header
LB: loop body
LE: loop exit
PB: predicated region body
PF: predicated region fallthrough
CT: control target
= control target key end

     0   :  { %7 = vsyncpa [#allocation4], 0  ;;  %s1140_s0 = inlined_call_operand.hbm [shape: f32[64,128], index: 0, kind: input, shape index: {}]   ;;  %s1141_s1 = inlined_call_operand.hbm [shape: f32[64,128], index: 1, kind: input, shape index: {}]   ;;  %s1142_s2 = inlined_call_operand.hbm [shape: f32[64,128], index: 2, kind: output, shape index: {}]  }
   0x1   :  { %9 = vsyncpa [#allocation4 + $0x1], 0 }
   0x2   :  { %10 = vsyncpa [#allocation7], 0 }
   0x3   :  { %11 = vsyncpa [#allocation5], 0 }
   0x4   :  { %13 = vsyncpa [#allocation5 + $0x1], 0  ;;  %s854_s9 = smov 0   ;;  %s856_s10 = smov 0  }
   0x5   :  { %s858_s11 = smov 0   ;;  %s860_s12 = smov 0  }
   0x6   :  { %s862_s13 = smov 0   ;;  %s864_s14 = smov 0  }
   0x7   :  { %s866_s15 = smov 0   ;;  %s868_s16 = smov 0  }
   0x8 LB: > { %s505_s17 = sadd.s32 4294967295, %s823_s16   ;;  %s506_s18 = sadd.s32 4294967294, %s823_s16   ;;  %s823_s16 = sphi %s868_s16, %s19_s16   ;;  %s819_s15 = sphi %s866_s15, %s1170_s15   ;;  %s815_s14 = sphi %s864_s14, %s1169_s14   ;;  %s811_s13 = sphi %s862_s13, %s1168_s13   ;;  %s807_s12 = sphi %s860_s12, %s1167_s12   ;;  %s803_s11 = sphi %s858_s11, %s1166_s11   ;;  %s799_s10 = sphi %s856_s10, %s1165_s10   ;;  %s795_s9 = sphi %s854_s9, %s1164_s9  }
   0x9   : > { %p51_p0 = scmp.ne.s32.totalorder %s799_s10, %s795_s9  ;;  %p898_p1 = scmp.eq.s32.totalorder %s505_s17, 0 }
   0xa   : > { %p902_p2 = scmp.eq.s32.totalorder %s505_s17, 7  ;;  %p102_p3 = scmp.eq.s32.totalorder %s506_s18, 7 }
   0xb   : > { %s1148_s19 = scalar_select %p898_p1, 1, 0 }
   0xc   : > { %s1149_s20 = scalar_select %p902_p2, 1, 0 }
   0xd   : > { %p908_p4 = por %p898_p1, %p51_p0  ;;  %p507_p5 = scmp.ge.s32.totalorder %s823_s16, 1 }
   0xe   : > { %p913_p6 = por %p102_p3, %p51_p0  ;;  %p109_p7 = scmp.lt.s32.totalorder %s823_s16, 9 }
   0xf   : > { %s1150_s21 = scalar_select %p908_p4, 1, 0 }
  0x10   : > { %s1151_s22 = scalar_select %p913_p6, 1, 0 }
  0x11   : > { %p918_p8 = pnand %p507_p5, %p109_p7  ;;  %s825_s24 = smov [#allocation6]  }
  0x12   : > { %s121_s25 = sshll.u32 %s825_s24, 4  ;;  %s663_s29 = scalar_lea.hbm %s1141_s1, 1024  ;;  %s122_s25 = int_to_ptr.vmem [resolvable:$true] %s121_s25 }
  0x13   : > { %s1152_s23 = scalar_select %p918_p8, 1, 0 }
  0x14   : > { %p563_p9 = pneg %p918_p8  ;;  %p664_p11 = scmp.ne.s32.totalorder %s1141_s1, %s663_s29 }
  0x15   : > { %p670_p3 = scmp.lt.u32.totalorder %s663_s29, %s1141_s1 }
  0x16   : > { %p926_p10 = pnand %p563_p9, %p898_p1 }
  0x18   : > { %p665_p12 = pneg %p926_p10 }
  0x1a   : > { %p666_p13 = pnand %p665_p12, %p664_p11 }
  0x1c   : > { %p667_p0 = pneg %p666_p13 }
  0x1e   : > { %p672_p5 = pnand %p670_p3, %p667_p0 }
  0x20   : > { %675 = shalt.err (!%p672_p5)
}
  0x21   : > { %s676_s6 = scalar_lea.vmem %s122_s25, 1024  ;;  %p684_p1 = scmp.lt.s32.totalorder %s122_s25, %s122_s25 }
  0x22   : > { %p677_p7 = scmp.ne.s32.totalorder %s122_s25, %s676_s6  ;;  %p685_p4 = scmp.lt.s32.totalorder %s676_s6, %s676_s6 }
  0x24   : > { %p679_p9 = pnand %p677_p7, %p665_p12  ;;  %p686_p8 = por %p685_p4, %p684_p1 }
  0x26   : > { %p680_p6 = pneg %p679_p9 }
  0x28   : > { %p687_p2 = pnand %p686_p8, %p680_p6 }
  0x2a   : > { %690 = shalt.err (!%p687_p2)
}
  0x2b   : > { %s1147_s7 = smov 128   ;;  %s827_s8 = smov 8  }
  0x2c   : > { %566 = dma.hbm_to_vmem [thread:$0]  (!%p926_p10), %s1141_s1, 1024, %s122_s25, [#allocation7], %s1147_s7, %s1147_s7, %s827_s8  }
  0x2d   : > { %s28_s24 = sadd.s32 1, %s815_s14  ;;  %s31_s27 = sadd.s32 1, %s819_s15 }
  0x2e   : > { %p29_p1 = scmp.ge.s32.totalorder %s28_s24, 2  ;;  %s38_s28 = sadd.s32 1, %s803_s11 }
  0x2f   : > { %p45_p2 = scmp.ne.s32.totalorder %s803_s11, %s799_s10  ;;  %p46_p4 = scmp.eq.s32.totalorder %s823_s16, 0 }
  0x30   : > { %s1172_s24 = smov (%p29_p1, %s28_s24), 0  ;;  %s1174_s27 = smov (!%p29_p1, %s31_s27), %s819_s15 }
  0x31   : > { %p1154_p6 = scmp.ne.s32.totalorder %s1149_s20, 0  ;;  %p33_p11 = scmp.ge.s32.totalorder %s1174_s27, 4 }
  0x32   : > { %p576_p10 = scmp.lt.s32.totalorder %s823_s16, 8  ;;  %p47_p12 = por %p46_p4, %p45_p2 }
  0x33   : > { %p960_p8 = por %p1154_p6, %p45_p2  ;;  %s135_s25 = sand.u32 1, %s803_s11  }
  0x34   : > { %s1176_s27 = smov (%p33_p11, %s1174_s27), 0  ;;  %s510_s29 = sshll.u32 %s135_s25, 4 }
  0x35   : > { %s35_s30 = ssub.s32 %s819_s15, %s1176_s27  ;;  %s528_s3 = sshll.u32 %s819_s15, 8 }
  0x36   : > { %p36_p13 = scmp.eq.s32.totalorder %s35_s30, 0  ;;  %s974_s20 = scalar_lea.hbm %s1140_s0, %s528_s3 }
  0x37   : > { %s139_s6 = scalar_lea.vmem [#allocation3], %s510_s29  ;;  %p983_p0 = pnand %p576_p10, %p47_p12 }
  0x38   : > { %s146_s17 = sshll.u32 %s139_s6, 4  ;;  %s987_s30 = scalar_lea.sflag [#allocation4], %s135_s25  ;;  %s979_s17 = int_to_ptr.vmem [resolvable:$true] %s146_s17 }
  0x39   : > { %s977_s18 = scalar_select %p36_p13, %s803_s11, %s38_s28  }
  0x3a   : > { %s691_s3 = scalar_lea.hbm %s974_s20, 256  ;;  %p693_p5 = pneg %p983_p0 }
  0x3b   : > { %p692_p3 = scmp.ne.s32.totalorder %s974_s20, %s691_s3  ;;  %s696_s4 = scalar_lea.hbm %s1140_s0, 1024 }
  0x3c   : > { %p697_p1 = scmp.lt.u32.totalorder %s974_s20, %s1140_s0  ;;  %p698_p2 = scmp.lt.u32.totalorder %s696_s4, %s691_s3 }
  0x3d   : > { %p694_p7 = pnand %p693_p5, %p692_p3  ;;  %p700_p6 = scmp.lt.u32.totalorder %s691_s3, %s974_s20 }
  0x3e   : > { %p699_p4 = por %p698_p2, %p697_p1 }
  0x3f   : > { %p695_p9 = pneg %p694_p7 }
  0x40   : > { %p701_p11 = por %p700_p6, %p699_p4 }
  0x42   : > { %p702_p10 = pnand %p701_p11, %p695_p9 }
  0x44   : > { %705 = shalt.err (!%p702_p10)
}
  0x45   : > { %s706_s25 = scalar_lea.vmem %s979_s17, 256  ;;  %s828_s28 = smov [#allocation3]  }
  0x46   : > { %p707_p12 = scmp.ne.s32.totalorder %s979_s17, %s706_s25  ;;  %s711_s29 = sshll.u32 %s828_s28, 4  ;;  %s712_s29 = int_to_ptr.vmem [resolvable:$false] %s711_s29 }
  0x47   : > { %s713_s5 = scalar_lea.vmem %s712_s29, 512  ;;  %p714_p7 = scmp.lt.s32.totalorder %s979_s17, %s712_s29 }
  0x48   : > { %p709_p13 = pnand %p707_p12, %p693_p5  ;;  %p715_p1 = scmp.lt.s32.totalorder %s713_s5, %s706_s25 }
  0x4a   : > { %p710_p3 = pneg %p709_p13  ;;  %p716_p2 = por %p715_p1, %p714_p7 }
  0x4c   : > { %p717_p4 = pnand %p716_p2, %p710_p3 }
  0x4e   : > { %720 = shalt.err (!%p717_p4)
}
  0x4f   : > { %s1157_s3 = smov 128   ;;  %p1158_p5 = scmp.ne.s32.totalorder %s1152_s23, 0 }
  0x50   : > { %570 = dma.hbm_to_vmem [thread:$0]  (!%p983_p0), %s974_s20, 256, %s979_s17, %s987_s30, %s1157_s3, %s1157_s3, %s827_s8  }
  0x51   : > { %158 = sbr.rel (%p1158_p5) target bundleno = 684 (0x2ac), region = 28  ;;  %s1021_s4 = sand.u32 (!%p1158_p5), 1, %s799_s10  }
  0x52   : > { %s514_s6 = sshll.u32 (!%p1158_p5), %s1021_s4, 4  ;;  %s161_s25 = scalar_lea.sflag (!%p1158_p5), [#allocation4], %s1021_s4 }
  0x53   : > { %s1025_s28 = scalar_lea.vmem (!%p1158_p5), [#allocation3], %s514_s6  ;;  %p1159_p9 = scmp.ne.s32.totalorder (!%p1158_p5), %s1150_s21, 0 }
  0x58   : > { %782 = dma.done.wait (%p1159_p9), %s161_s25, 256  }
  0x59   : > { %784 = vsyncadd (%p1159_p9), %s161_s25, 4294967040  ;;  %p1160_p0 = scmp.ne.s32.totalorder %s1148_s19, 0 }
  0x5b   : > { %786 = dma.done.wait (%p1160_p0), [#allocation7], 1024  }
  0x5c   : > { %788 = vsyncadd (%p1160_p0), [#allocation7], 4294966272  ;;  %s1035_s23 = scalar_lea.vmem [#allocation8], %s514_s6  ;;  %p517_p6 = scmp.ne.s32.totalorder %s807_s12, 0 }
  0x5d   : > { %vm195_vm0 = vcmask (!%p517_p6), 64512   ;;  %v829_v0 = vmov (!%p517_p6), 0.0  }
  0x5e   : > { %194 = sbr.rel (%p517_p6) target bundleno = 101 (0x65), region = 40  ;;  %196 = vst.msk [vmem:[#allocation2] sm:$0xff] (!%p517_p6), %vm195_vm0, %v829_v0  ;;  %197 = vst.msk [vmem:[#allocation2 + $0x8] sm:$0xff] (!%p517_p6), %vm195_vm0, %v829_v0 }
  0x65 PF: > { %s1039_s21 = sshll.u32 %s807_s12, 5  ;;  %s1042_s19 = sshll.u32 %s811_s13, 4  ;;  %v198_v1 = vld [vmem:[%s1025_s28] sm:$0xff]  ;;  %v199_v8 = vld [vmem:[%s1025_s28 + $0x8] sm:$0xff]  ;;  %vm317_vm1 = vcmask 64512  }
  0x66   : > { %s321_s7 = sadd.s32 32, %s1039_s21  ;;  %544 = vmatprep.mubr.f32.mxu0 %v198_v1  ;;  %s201_s8 = scalar_lea.vmem [#allocation6], %s1039_s21  ;;  %v288_v25 = vld [vmem:[#allocation2 + $0x8] sm:$0xff]  ;;  %v287_v27 = vld [vmem:[#allocation2] sm:$0xff] }
  0x67   : > { %v202_v2 = vld [vmem:[%s201_s8] sm:$0xff]  ;;  %v203_v3 = vld [vmem:[%s201_s8 + $0x8] sm:$0xff]  ;;  %p1048_p11 = scmp.lt.s32.totalorder %s1042_s19, %s321_s7  ;;  %s323_s17 = sadd.s32 16, %s1042_s19  ;;  %v204_v4 = vld [vmem:[%s201_s8 + $0x10] sm:$0xff] }
  0x68   : > { %v547_v5 = vpack.c.bf16 %v203_v3, %v202_v2  ;;  %p1054_p10 = scmp.lt.s32.totalorder %s1039_s21, %s323_s17  ;;  %v205_v6 = vld [vmem:[%s201_s8 + $0x18] sm:$0xff]  ;;  %s830_s29 = smov 112  }
  0x69   : > { %v551_v7 = vpack.c.bf16 %v205_v6, %v204_v4  ;;  %s831_s5 = smov 120   ;;  %s832_s3 = smov 104  }
  0x6a   : > { %548 = vmatprep.subr.bf16.mxu0 %v547_v5  ;;  %p325_p12 = pnand %p1054_p10, %p1048_p11 }
  0x6b   : > { %550 = vmatpush3.bf16.xpose.msra.mxu0 %v547_v5  ;;  %v329_v33 = vlaneseq (!%p325_p12)  ;;  %v332_v34 = vstv (!%p325_p12), %s1042_s19  ;;  %v337_v35 = vstv (!%p325_p12), %s1039_s21  ;;  %s833_s6 = smov (!%p325_p12), 112   ;;  %s834_s25 = smov (!%p325_p12), 120  }
  0x6c   : > { %552 = vmatprep.subr.bf16.mxu0 %v551_v7  ;;  %s835_s28 = smov (!%p325_p12), 104  }
  0x6d   : > { %v330_v36 = vshrl.u32 (!%p325_p12), %v329_v33, 7  ;;  %v336_v37 = vand.u32 (!%p325_p12), 127, %v329_v33 }
  0x6f   : > { %v333_v38 = vadd.s32 (!%p325_p12), %v332_v34, %v330_v36  ;;  %v338_v39 = vadd.s32 (!%p325_p12), %v337_v35, %v336_v37  ;;  %v331_v40 = vadd.s32 (!%p325_p12), 8, %v330_v36 }
  0x71   : > { %vm339_vm2 = vcmp.eq.s32.totalorder (!%p325_p12), %v338_v39, %v333_v38  ;;  %v334_v41 = vadd.s32 (!%p325_p12), %v332_v34, %v331_v40 }
  0x73   : > { %554 = vmatpush3.bf16.xpose.msra.mxu0 %v551_v7  ;;  %vm340_vm3 = vcmp.eq.s32.totalorder (!%p325_p12), %v338_v39, %v334_v41 }
  0x7a   : > { %545 = vmatmul.mubr.f32.vlgmr.msra.gmra.mrb[0].mxu0 %v199_v8 }
 0x14d   : > { %v546_v9 = vpop.f32.mrb[0].mxu0 }
 0x14e   : > { %v520_v10 = vadd.f32 -10.0, %v546_v9  ;;  %v272_v11 = vpop.f32.mrb[1].mxu0 }
 0x14f   : > { %v519_v12 = vadd.f32 -10.0, %v272_v11 }
 0x150   : > { %v285_v13 = vmul.f32 1.442695, %v520_v10 }
 0x151   : > { %v283_v14 = vmul.f32 1.442695, %v519_v12 }
 0x152   : > { %655 = vpow2.f32 %v285_v13 }
 0x153   : > { %657 = vpow2.f32 %v283_v14 }
 0x15c   : > { %v656_v15 = vpop.eup %655 }
 0x15d   : > { %301 = vrot.lane.b32.xlu1 %v656_v15, %s830_s29  ;;  %293 = vrot.lane.b32.xlu0 %v656_v15, %s831_s5  ;;  %v658_v16 = vpop.eup %657  ;;  %v342_v43 = vsel (!%p325_p12), %vm340_vm3, %v656_v15, 0.0 }
 0x15e   : > { %v341_v42 = vsel (!%p325_p12), %vm339_vm2, %v658_v16, 0.0 }
 0x161   : > { %299 = vrot.lane.b32.xlu1 %v658_v16, %s830_s29  ;;  %291 = vrot.lane.b32.xlu0 %v658_v16, %s831_s5 }
 0x165   : > { %309 = vrot.lane.b32.xlu1 %v656_v15, %s832_s3  ;;  %307 = vrot.lane.b32.xlu0 %v658_v16, %s832_s3 }
 0x169   : > { %355 = vrot.lane.b32.xlu1 (!%p325_p12), %v341_v42, %s833_s6  ;;  %347 = vrot.lane.b32.xlu0 (!%p325_p12), %v341_v42, %s834_s25 }
 0x16d   : > { %357 = vrot.lane.b32.xlu1 (!%p325_p12), %v342_v43, %s833_s6  ;;  %349 = vrot.lane.b32.xlu0 (!%p325_p12), %v342_v43, %s834_s25 }
 0x171   : > { %365 = vrot.lane.b32.xlu1 (!%p325_p12), %v342_v43, %s835_s28  ;;  %363 = vrot.lane.b32.xlu0 (!%p325_p12), %v341_v42, %s835_s28 }
 0x1cf   : > { %v302_v17 = vpop.permute.xlu1 %301  ;;  %v294_v18 = vpop.permute.xlu0 %293 }
 0x1d0   : > { %v298_v19 = vadd.f32 %v656_v15, %v294_v18 }
 0x1d2   : > { %v306_v23 = vadd.f32 %v302_v17, %v298_v19 }
 0x1d3   : > { %v300_v20 = vpop.permute.xlu1 %299  ;;  %v292_v21 = vpop.permute.xlu0 %291 }
 0x1d4   : > { %v297_v22 = vadd.f32 %v658_v16, %v292_v21 }
 0x1d6   : > { %v305_v24 = vadd.f32 %v300_v20, %v297_v22  ;;  %328 = sbr.rel (%p325_p12) target bundleno = 489 (0x1e9), region = 44 }
 0x1d7   : > { %v310_v26 = vpop.permute.xlu1 %309  ;;  %v308_v28 = vpop.permute.xlu0 %307 }
 0x1d8   : > { %v314_v29 = vadd.f32 %v310_v26, %v306_v23  ;;  %v313_v30 = vadd.f32 %v308_v28, %v305_v24 }
 0x1da   : > { %v316_v31 = vadd.f32 %v314_v29, %v288_v25  ;;  %v315_v32 = vadd.f32 %v313_v30, %v287_v27 }
 0x1db   : > { %v356_v44 = vpop.permute.xlu1 (!%p325_p12), %355  ;;  %v348_v45 = vpop.permute.xlu0 (!%p325_p12), %347 }
 0x1dc   : > { %319 = vst.msk [vmem:[#allocation2 + $0x8] sm:$0xff] %vm317_vm1, %v316_v31  ;;  %318 = vst.msk [vmem:[#allocation2] sm:$0xff] %vm317_vm1, %v315_v32  ;;  %v353_v46 = vadd.f32 (!%p325_p12), %v348_v45, %v341_v42 }
 0x1de   : > { %v361_v51 = vadd.f32 %v356_v44, %v353_v46 }
 0x1df   : > { %v358_v47 = vpop.permute.xlu1 %357  ;;  %v350_v48 = vpop.permute.xlu0 %349 }
 0x1e0   : > { %v354_v49 = vadd.f32 %v350_v48, %v342_v43 }
 0x1e2   : > { %v362_v50 = vadd.f32 %v358_v47, %v354_v49 }
 0x1e3   : > { %v344_v52 = vld [vmem:[#allocation2 + $0x8] sm:$0xff]  ;;  %v366_v53 = vpop.permute.xlu1 %365  ;;  %v343_v54 = vld [vmem:[#allocation2] sm:$0xff]  ;;  %v364_v55 = vpop.permute.xlu0 %363 }
 0x1e4   : > { %v370_v56 = vadd.f32 %v366_v53, %v362_v50  ;;  %v369_v57 = vadd.f32 %v364_v55, %v361_v51 }
 0x1e6   : > { %v372_v58 = vsub.f32 %v344_v52, %v370_v56  ;;  %v371_v59 = vsub.f32 %v343_v54, %v369_v57 }
 0x1e8   : > { %374 = vst.msk [vmem:[#allocation2 + $0x8] sm:$0xff] %vm317_vm1, %v372_v58  ;;  %373 = vst.msk [vmem:[#allocation2] sm:$0xff] %vm317_vm1, %v371_v59 }
 0x1e9 PF: > { %p522_p13 = scmp.ne.s32.totalorder %s807_s12, 1 }
 0x1eb   : > { %378 = sbr.rel (%p522_p13) target bundleno = 659 (0x293), region = 48 }
 0x1ef   : > { %v379_v60 = vld [vmem:[#allocation2] sm:$0xff] (!%p522_p13)  ;;  %v380_v61 = vld [vmem:[#allocation2 + $0x8] sm:$0xff] (!%p522_p13) }
 0x1f0   : > { %v381_v62 = vsel (!%p522_p13), %vm317_vm1, %v379_v60, 0.0  ;;  %v384_v63 = vsel (!%p522_p13), %vm317_vm1, %v380_v61, 0.0 }
 0x1f1   : > { %382 = vadd.xlane.f32.xlu0 (!%p522_p13), %v381_v62 }
 0x1f5   : > { %385 = vadd.xlane.f32.xlu0 %v384_v63 }
 0x27e   : > { %v383_v0 = vpop.xlane.xlu0 %382 }
 0x27f   : > { %659 = vlog2.f32 %v383_v0 }
 0x282   : > { %v386_v1 = vpop.xlane.xlu0 %385 }
 0x283   : > { %661 = vlog2.f32 %v386_v1 }
 0x289   : > { %v660_v2 = vpop.eup %659 }
 0x28a   : > { %v388_v3 = vmul.f32 0.6931472, %v660_v2 }
 0x28c   : > { %v391_v4 = vadd.f32 10.0, %v388_v3 }
 0x28d   : > { %v662_v5 = vpop.eup %661 }
 0x28e   : > { %393 = vst [vmem:[%s1035_s23] sm:$0xff] %v391_v4  ;;  %v390_v6 = vmul.f32 0.6931472, %v662_v5 }
 0x290   : > { %v392_v7 = vadd.f32 10.0, %v390_v6 }
 0x292   : > { %394 = vst [vmem:[%s1035_s23 + $0x8] sm:$0xff] %v392_v7 }
 0x293 PF: > { %s529_s12 = sshll.u32 %s811_s13, 8  ;;  %s409_s8 = sshll.u32 %s1035_s23, 4  ;;  %s1086_s8 = int_to_ptr.vmem [resolvable:$true] %s409_s8 }
 0x294   : > { %s1083_s7 = scalar_lea.hbm %s1142_s2, %s529_s12  ;;  %s396_s20 = scalar_lea.sflag [#allocation5], %s1021_s4 }
 0x295   : > { %s721_s17 = scalar_lea.vmem %s1086_s8, 256  ;;  %s836_s30 = smov [#allocation8]  }
 0x296   : > { %p722_p3 = scmp.ne.s32.totalorder %s1086_s8, %s721_s17  ;;  %s725_s29 = sshll.u32 %s836_s30, 4  ;;  %s726_s29 = int_to_ptr.vmem [resolvable:$false] %s725_s29 }
 0x297   : > { %s727_s13 = scalar_lea.vmem %s726_s29, 512  ;;  %p728_p2 = scmp.lt.s32.totalorder %s1086_s8, %s726_s29 }
 0x298   : > { %p723_p7 = pnand %p722_p3, %p960_p8  ;;  %p729_p4 = scmp.lt.s32.totalorder %s727_s13, %s721_s17 }
 0x29a   : > { %p724_p1 = pneg %p723_p7  ;;  %p730_p5 = por %p729_p4, %p728_p2 }
 0x29c   : > { %p731_p9 = pnand %p730_p5, %p724_p1 }
 0x29e   : > { %734 = shalt.err (!%p731_p9)
}
 0x29f   : > { %s735_s23 = scalar_lea.hbm %s1083_s7, 256  ;;  %s739_s6 = scalar_lea.hbm %s1142_s2, 1024 }
 0x2a0   : > { %p736_p0 = scmp.ne.s32.totalorder %s1083_s7, %s735_s23  ;;  %p740_p10 = scmp.lt.u32.totalorder %s1083_s7, %s1142_s2 }
 0x2a1   : > { %p741_p12 = scmp.lt.u32.totalorder %s739_s6, %s735_s23  ;;  %p743_p3 = scmp.lt.u32.totalorder %s735_s23, %s1083_s7 }
 0x2a2   : > { %p737_p6 = pnand %p736_p0, %p960_p8 }
 0x2a3   : > { %p742_p13 = por %p741_p12, %p740_p10 }
 0x2a4   : > { %p738_p11 = pneg %p737_p6 }
 0x2a5   : > { %p744_p7 = por %p743_p3, %p742_p13 }
 0x2a7   : > { %p745_p1 = pnand %p744_p7, %p738_p11 }
 0x2a9   : > { %748 = shalt.err (!%p745_p1)
}
 0x2aa   : > { %s837_s12 = smov 128   ;;  %s838_s21 = smov 8  }
 0x2ab   : > { %561 = dma.vmem_to_hbm [thread:$0]  (%p960_p8), %s1086_s8, 256, %s1083_s7, %s396_s20, %s837_s12, %s837_s12, %s838_s21  }
 0x2ac PF: > { %p578_p2 = scmp.ge.s32.totalorder %s823_s16, 2  ;;  %s424_s19 = sand.u32 1, %s795_s9  }
 0x2ad   : > { %p1163_p4 = scmp.ne.s32.totalorder %s1151_s22, 0  ;;  %s425_s17 = scalar_lea.sflag [#allocation5], %s424_s19 }
 0x2af   : > { %p572_p5 = pnand %p578_p2, %p1163_p4 }
 0x2b1   : > { %790 = dma.done.wait (!%p572_p5), %s425_s17, 256  }
 0x2b2   : > { %792 = vsyncadd (!%p572_p5), %s425_s17, 4294967040  ;;  %s19_s16 = sadd.s32 1, %s823_s16   ;;  %s1164_s9 = smov %s799_s10 }
 0x2b3   : > { %p16_p9 = scmp.ge.s32.totalorder %s19_s16, 10   ;;  %s1165_s10 = smov %s803_s11 }
 0x2b4   : > { %s1166_s11 = smov %s977_s18  ;;  %s1167_s12 = smov %s815_s14 }
 0x2b5   : > { %s1168_s13 = smov %s819_s15  ;;  %s1169_s14 = smov %s1172_s24 }
 0x2b6   : > { %s1170_s15 = smov %s1176_s27  ;;  %18 = sbr.rel (!%p16_p9) target bundleno = 8 (0x8), region = 90 }
 0x2bd   :  { %430 = vsyncpa [#allocation4], 1 }
 0x2be   :  { %432 = vsyncpa [#allocation4 + $0x1], 1 }
 0x2bf   :  { %433 = vsyncpa [#allocation7], 1 }
 0x2c0   :  { %434 = vsyncpa [#allocation5], 1 }
 0x2c1   :  { %436 = vsyncpa [#allocation5 + $0x1], 1 }

</bundles_post_ra>
